<compile_context>
chip_gen: v6e
topology: v6e:2x2x1
jax: 0.10.0
libtpu: 0.0.40
codegen_flags: <defaults>
</compile_context>

<pallas_src>
import functools
import math

import jax
import jax.numpy as jnp
from jax import lax
from jax.experimental import pallas as pl
from jax.experimental.pallas import tpu as pltpu


# ---------------------------------------------------------------------------
# Slab layout (row offsets into the (rows, D) parameter slab).  All matrix row
# counts are multiples of 8 at the demo config, so every matrix view is
# sublane-tile aligned.
# ---------------------------------------------------------------------------
def _slab_offsets(B, S, Cin, D, H):
    N = B * S
    layout = [
        ("wconv", 2 * Cin),        # [w_tap0 ; w_tap1], each (Cin, D)
        ("wq", D), ("wk", D), ("wv", D), ("wo", D),
        ("wf2", 4 * D),            # FFN second linear (4D, D)
        ("wh", B * N),             # folded batch-mixing head weight (B*N, D)
        ("pe", N),                 # positional encoding tiled over batch (N, D)
        ("hmask", H * N),          # per-(head,row) lane mask (H*N, D)
        ("conv_b", 1), ("bq", 1), ("bk", 1), ("bv", 1), ("bo", 1), ("bf2", 1),
        ("ln1w", 1), ("ln1b", 1), ("ln2w", 1), ("ln2b", 1), ("bout", 1),
    ]
    off, cur = {}, 0
    for name, rows in layout:
        off[name] = cur
        cur += rows
    total = cur + ((-cur) % 8)
    return off, total


def _build_head_weight(out_w, batch, seq, dim):
    """Fold the batch-mixing `x.reshape(bs, -1)` + Linear(S*D, 1) into per-row weights.

    PyTorch flattens the (S, B, D) encoder output row-major and reshapes it to
    (B, S*D) before the output Linear.  Re-expressed on the kernel's (B*S, D)
    activation (row n = b*S + s):  out[r] = sum_{n,d} enc[n, d] * wh[r, n, d].
    """
    w = jnp.asarray(out_w, jnp.float32).reshape(-1)          # (S*D,)
    sz = seq * dim
    rows = []
    for r in range(batch):
        rows.append(jnp.concatenate([
            jnp.zeros((r * sz,), w.dtype), w,
            jnp.zeros(((batch - 1 - r) * sz,), w.dtype)]))
    wbig = jnp.stack(rows, axis=0)                           # (B, S*B*D)
    wh = wbig.reshape(batch, seq, batch, dim)                # [r, s, b, d]
    wh = jnp.transpose(wh, (0, 2, 1, 3))                     # [r, b, s, d]
    return wh.reshape(batch, batch * seq, dim)               # [r, n=b*S+s, d]


def pack_convbert_params(params, *, batch, seq, in_channels, num_heads):
    """Pack all parameters into two VMEM-friendly slabs (done once, outside jit)."""
    f32 = jnp.float32
    B, S, Cin, H = batch, seq, in_channels, num_heads
    conv_w = jnp.asarray(params["conv_w"], f32)              # (D, Cin, 2)
    D = conv_w.shape[0]
    N = B * S
    Dh = D // H

    off, total = _slab_offsets(B, S, Cin, D, H)

    inw = jnp.asarray(params["in_proj_w"], f32)              # (3D, D)
    inb = jnp.asarray(params["in_proj_b"], f32)              # (3D,)

    def r(v):
        return jnp.asarray(v, f32).reshape(1, D)

    # Head lane mask, pre-broadcast to (H*N, D): mask[h*N + n, d] = (d // Dh == h).
    hm = (jnp.arange(D) // Dh == jnp.arange(H)[:, None]).astype(f32)   # (H, D)
    hm_full = jnp.repeat(hm, N, axis=0)                                # (H*N, D)

    pieces = [
        jnp.concatenate([conv_w[:, :, 0].T, conv_w[:, :, 1].T], axis=0),   # wconv
        inw[0:D].T, inw[D:2 * D].T, inw[2 * D:3 * D].T,                    # wq wk wv
        jnp.asarray(params["out_proj_w"], f32).T,                          # wo
        jnp.asarray(params["ff2_w"], f32).T,                               # wf2
        _build_head_weight(params["out_w"], B, S, D).reshape(B * N, D),    # wh
        jnp.tile(jnp.asarray(params["pos_enc"], f32), (B, 1)),             # pe tiled
        hm_full,                                                           # hmask
        r(params["conv_b"]),
        r(inb[0:D]), r(inb[D:2 * D]), r(inb[2 * D:3 * D]),
        r(params["out_proj_b"]), r(params["ff2_b"]),
        r(params["ln1_w"]), r(params["ln1_b"]), r(params["ln2_w"]), r(params["ln2_b"]),
        jnp.full((1, D), jnp.asarray(params["out_b"], f32).reshape(())),   # bout
    ]
    w32 = jnp.concatenate(pieces, axis=0)
    if w32.shape[0] < total:
        w32 = jnp.concatenate(
            [w32, jnp.zeros((total - w32.shape[0], D), f32)], axis=0)

    # Second slab: FFN first linear (D, 4D) + its bias row, padded to 8-row multiple.
    wf1 = jnp.asarray(params["ff1_w"], f32).T                 # (D, 4D)
    bf1 = jnp.asarray(params["ff1_b"], f32).reshape(1, 4 * D)
    pad = (-(D + 1)) % 8
    w128_pieces = [wf1, bf1]
    if pad:
        w128_pieces.append(jnp.zeros((pad, 4 * D), f32))
    w128 = jnp.concatenate(w128_pieces, axis=0)
    return w32, w128


# ---------------------------------------------------------------------------
# Fused kernel: one grid step = one full ConvBERT forward for one instance.
# Causal conv + tanh + scale + pos-enc + post-norm TransformerEncoderLayer
# (MHA + FFN + 2x LayerNorm) + batch-mixing output head.
# ---------------------------------------------------------------------------
def convbert_kernel(x_ref, w32_ref, w128_ref, o_ref, *, B, S, Cin, D, H, off):
    N = B * S
    Dh = D // H
    HB = H * B
    sqrt_d = math.sqrt(float(D))
    inv_sqrt_dh = 1.0 / math.sqrt(float(Dh))
    eps = 1e-5
    f32 = jnp.float32

    def mat(name, rows):
        r0 = off[name]
        return w32_ref[r0:r0 + rows, :]

    def vec(name):
        r0 = off[name]
        return w32_ref[r0:r0 + 1, :]

    # ---- CausalConv1d(k=2) + tanh (ContextEmbedding), batched over B*S rows ----
    xf = x_ref[...].reshape(N, Cin)                          # row n = b*S + s
    x_prev = pltpu.roll(xf, 1, 0)                            # x_prev[n] = xf[n-1]
    row = lax.broadcasted_iota(jnp.int32, (N, 1), 0)
    x_prev = jnp.where(row % S == 0, 0.0, x_prev)            # causal left-pad per sequence
    w0 = w32_ref[off["wconv"]:off["wconv"] + Cin, :]         # tap applied to x[t-1]
    w1 = w32_ref[off["wconv"] + Cin:off["wconv"] + 2 * Cin, :]  # tap applied to x[t]
    emb = jnp.tanh(
        jnp.dot(x_prev, w0, preferred_element_type=f32)
        + jnp.dot(xf, w1, preferred_element_type=f32)
        + vec("conv_b"))                                     # (N, D)

    # scale by sqrt(dim_model) + positional encoding (dropout = identity)
    hf = emb * sqrt_d + mat("pe", N)                         # (N, D)

    # ---- MultiheadAttention: all heads in one batched dot chain, no lane slicing ----
    q = jnp.dot(hf, mat("wq", D), preferred_element_type=f32) + vec("bq")
    k = jnp.dot(hf, mat("wk", D), preferred_element_type=f32) + vec("bk")
    v = jnp.dot(hf, mat("wv", D), preferred_element_type=f32) + vec("bv")
    q3 = q.reshape(B, S, D)
    k3 = k.reshape(B, S, D)
    v3 = v.reshape(B, S, D)

    hmask = mat("hmask", HB * S).reshape(HB, S, D)           # one-hot head lanes
    qm = jnp.concatenate([q3] * H, axis=0) * hmask           # (HB, S, D) head-masked Q
    kb = jnp.concatenate([k3] * H, axis=0)                   # (HB, S, D) full K
    vm = jnp.concatenate([v3] * H, axis=0) * hmask           # (HB, S, D) head-masked V

    # (Q ⊙ m_h) · K contracts only head-h lanes -> per-head scores in one batched dot.
    s = lax.dot_general(qm, kb, (((2,), (2,)), ((0,), (0,))),
                        preferred_element_type=f32) * inv_sqrt_dh     # (HB, S, S)
    s = s - jnp.max(s, axis=-1, keepdims=True)
    p = jnp.exp(s)
    p = p / jnp.sum(p, axis=-1, keepdims=True)               # exact softmax
    a = lax.dot_general(p, vm, (((2,), (1,)), ((0,), (0,))),
                        preferred_element_type=f32)          # (HB, S, D), head-disjoint lanes
    a = jnp.sum(a.reshape(H, B, S, D), axis=0).reshape(N, D) # = concat of head outputs
    attn = jnp.dot(a, mat("wo", D), preferred_element_type=f32) + vec("bo")

    # residual + LayerNorm1 (post-norm)
    x1 = hf + attn
    mu = jnp.mean(x1, axis=-1, keepdims=True)
    var = jnp.mean((x1 - mu) ** 2, axis=-1, keepdims=True)
    x1 = (x1 - mu) * lax.rsqrt(var + eps) * vec("ln1w") + vec("ln1b")

    # FFN (relu) + residual + LayerNorm2
    f = jnp.dot(x1, w128_ref[0:D, :], preferred_element_type=f32) + w128_ref[D:D + 1, :]
    f = jnp.maximum(f, 0.0)
    f = jnp.dot(f, mat("wf2", 4 * D), preferred_element_type=f32) + vec("bf2")
    x2 = x1 + f
    mu2 = jnp.mean(x2, axis=-1, keepdims=True)
    var2 = jnp.mean((x2 - mu2) ** 2, axis=-1, keepdims=True)
    x2 = (x2 - mu2) * lax.rsqrt(var2 + eps) * vec("ln2w") + vec("ln2b")

    # ---- batch-mixing output head (reshape(bs,-1) + Linear folded into wh) ----
    wh = mat("wh", B * N).reshape(B, N, D)
    prod = x2[None, :, :] * wh                               # (B, N, D)
    res = jnp.sum(jnp.sum(prod, axis=2, keepdims=True), axis=1)   # (B, 1)
    o_ref[...] = res + vec("bout")[:, 0:1]


def convbert_forward(x, w32, w128, *, num_heads):
    """x: (NI, B, S, Cin) or (B, S, Cin) float32.  Returns (NI, B, 1) / (B, 1)."""
    squeeze = (x.ndim == 3)
    if squeeze:
        x = x[None]
    NI, B, S, Cin = x.shape
    D = w32.shape[1]
    off, total = _slab_offsets(B, S, Cin, D, num_heads)
    assert w32.shape[0] == total, "parameter slab does not match model dims"

    kernel = functools.partial(convbert_kernel,
                               B=B, S=S, Cin=Cin, D=D, H=num_heads, off=off)

    out = pl.pallas_call(
        kernel,
        out_shape=jax.ShapeDtypeStruct((NI, B, 1), jnp.float32),
        grid=(NI,),
        in_specs=[
            pl.BlockSpec((None, B, S, Cin), lambda i: (i, 0, 0, 0)),
            # Constant index maps -> weight slabs stay resident across grid steps.
            pl.BlockSpec(w32.shape, lambda i: (0, 0)),
            pl.BlockSpec(w128.shape, lambda i: (0, 0)),
        ],
        out_specs=pl.BlockSpec((None, B, 1), lambda i: (i, 0, 0)),
        # Instances are independent -> "parallel" (uses both TensorCores on v7x;
        # neutral on v5e/v6e).  Per-step VMEM is <1 MiB, far under every budget.
        compiler_params=pltpu.CompilerParams(dimension_semantics=("parallel",)),
    )(x, w32, w128)
    return out[0] if squeeze else out


def init_params(key, *, dim_model, max_len, in_channels=8):
    """Deterministic parameters in (close-to) PyTorch layout."""
    D, S, Cin = dim_model, max_len, in_channels
    ks = jax.random.split(key, 12)
    n = lambda k, shape, s=0.05: (s * jax.random.normal(k, shape)).astype(jnp.float32)

    # PositionalEncoding buffer (note: 1000.0, exactly as in the module)
    pos = jnp.arange(S, dtype=jnp.float32)[:, None]
    div = jnp.exp(jnp.arange(0, D, 2, dtype=jnp.float32) * (-math.log(1000.0) / D))
    pe = jnp.zeros((S, D), jnp.float32)
    pe = pe.at[:, 0::2].set(jnp.sin(pos * div))
    pe = pe.at[:, 1::2].set(jnp.cos(pos * div))

    return {
        "conv_w": n(ks[0], (D, Cin, 2)),        # CausalConv1d weight (out, in, k)
        "conv_b": n(ks[1], (D,)),
        "pos_enc": pe,                          # (S, D)
        "in_proj_w": n(ks[2], (3 * D, D)),      # MHA packed q|k|v
        "in_proj_b": n(ks[3], (3 * D,)),
        "out_proj_w": n(ks[4], (D, D)),
        "out_proj_b": n(ks[5], (D,)),
        "ff1_w": n(ks[6], (4 * D, D)), "ff1_b": n(ks[7], (4 * D,)),
        "ff2_w": n(ks[8], (D, 4 * D)), "ff2_b": n(ks[9], (D,)),
        "ln1_w": jnp.ones((D,), jnp.float32), "ln1_b": jnp.zeros((D,), jnp.float32),
        "ln2_w": jnp.ones((D,), jnp.float32), "ln2_b": jnp.zeros((D,), jnp.float32),
        "out_w": n(ks[10], (1, D * S)), "out_b": n(ks[11], (1,)),
    }


if __name__ == "__main__":
    # ConvBERT(dim_model=32, num_heads=4, dropout_p=0.0, max_len=8); input (B, S, 8).
    # NI independent forward instances are batched into one pallas_call (grid axis).
    B, S, CIN, D, H = 2, 8, 8, 32, 4
    NI = 4

    key = jax.random.PRNGKey(0)
    kx, kp = jax.random.split(key)
    x = jax.random.normal(kx, (NI, B, S, CIN), dtype=jnp.float32)
    params = init_params(kp, dim_model=D, max_len=S, in_channels=CIN)

    # Pack parameters once (outside the jitted forward): 2 slab DMAs instead of 19.
    w32, w128 = pack_convbert_params(params, batch=B, seq=S, in_channels=CIN, num_heads=H)

    fwd = jax.jit(functools.partial(convbert_forward, num_heads=H))
    out = fwd(x, w32, w128)
    jax.block_until_ready(out)
    assert out.shape == (NI, B, 1)
    print("KERNEL_OK")
</pallas_src>

<mosaic_0001>
module attributes {stable_mosaic.version = 11 : i64} {
  func.func @convbert_kernel(%arg0: i32, %arg1: memref<1x2x8x8xf32, #tpu.memory_space<vmem>>, %arg2: memref<400x32xf32, #tpu.memory_space<vmem>>, %arg3: memref<40x128xf32, #tpu.memory_space<vmem>>, %arg4: memref<1x2x1xf32, #tpu.memory_space<vmem>>) attributes {dimension_semantics = [#tpu.dimension_semantics<parallel>], iteration_bounds = array<i64: 4>, scalar_prefetch = 0 : i64, scratch_operands = 0 : i64, tpu.core_type = #tpu.core_type<tc>, window_params = [{transform_indices = @transform_0, window_bounds = array<i64: 1, 2, 8, 8>}, {pipeline_mode = #tpu.pipeline_mode<synchronous>, transform_indices = @transform_1, window_bounds = array<i64: 400, 32>}, {pipeline_mode = #tpu.pipeline_mode<synchronous>, transform_indices = @transform_2, window_bounds = array<i64: 40, 128>}, {transform_indices = @transform_3, window_bounds = array<i64: 1, 2, 1>}]} {
    %c0 = arith.constant 0 : index
    %c0_0 = arith.constant 0 : index
    %c0_1 = arith.constant 0 : index
    %c0_2 = arith.constant 0 : index
    %0 = vector.load %arg1[%c0, %c0_0, %c0_1, %c0_2] : memref<1x2x8x8xf32, #tpu.memory_space<vmem>>, vector<1x2x8x8xf32>
    %1 = vector.shape_cast %0 : vector<1x2x8x8xf32> to vector<2x8x8xf32>
    %2 = vector.shape_cast %1 : vector<2x8x8xf32> to vector<16x8xf32>
    %c1_i32 = arith.constant 1 : i32
    %3 = tpu.dynamic_rotate %2 by %c1_i32 dim 0 : vector<16x8xf32>, i32 -> vector<16x8xf32>
    %4 = tpu.iota {dimensions = array<i32: 0>} : vector<16x1xi32>
    %c8_i32 = arith.constant 8 : i32
    %c0_i32 = arith.constant 0 : i32
    %5 = arith.cmpi eq, %c8_i32, %c0_i32 : i32
    %c1_i32_3 = arith.constant 1 : i32
    %6 = arith.select %5, %c1_i32_3, %c8_i32 : i32
    %7 = vector.broadcast %6 : i32 to vector<16x1xi32>
    %8 = arith.remsi %4, %7 : vector<16x1xi32>
    %c0_i32_4 = arith.constant 0 : i32
    %9 = vector.broadcast %c0_i32_4 : i32 to vector<16x1xi32>
    %10 = arith.cmpi ne, %8, %9 : vector<16x1xi32>
    %c0_i32_5 = arith.constant 0 : i32
    %11 = vector.broadcast %c0_i32_5 : i32 to vector<16x1xi32>
    %12 = arith.cmpi slt, %8, %11 : vector<16x1xi32>
    %c0_i32_6 = arith.constant 0 : i32
    %13 = arith.cmpi slt, %6, %c0_i32_6 : i32
    %14 = vector.broadcast %13 : i1 to vector<16x1xi1>
    %15 = vector.broadcast %14 : vector<16x1xi1> to vector<16x1xi1>
    %16 = arith.xori %12, %15 : vector<16x1xi1>
    %17 = arith.andi %16, %10 : vector<16x1xi1>
    %18 = vector.broadcast %6 : i32 to vector<16x1xi32>
    %19 = arith.addi %8, %18 : vector<16x1xi32>
    %20 = arith.select %17, %19, %8 : vector<16x1xi1>, vector<16x1xi32>
    %c0_i32_7 = arith.constant 0 : i32
    %21 = vector.broadcast %c0_i32_7 : i32 to vector<16x1xi32>
    %22 = arith.cmpi eq, %20, %21 : vector<16x1xi32>
    %cst = arith.constant 0.000000e+00 : f32
    %23 = vector.shape_cast %22 : vector<16x1xi1> to vector<16x1xi1>
    %24 = vector.broadcast %23 : vector<16x1xi1> to vector<16x8xi1>
    %25 = vector.broadcast %cst : f32 to vector<16x8xf32>
    %26 = arith.select %24, %25, %3 : vector<16x8xi1>, vector<16x8xf32>
    %c0_8 = arith.constant 0 : index
    %c0_9 = arith.constant 0 : index
    %27 = vector.load %arg2[%c0_8, %c0_9] : memref<400x32xf32, #tpu.memory_space<vmem>>, vector<8x32xf32>
    %c8 = arith.constant 8 : index
    %c0_10 = arith.constant 0 : index
    %28 = vector.load %arg2[%c8, %c0_10] : memref<400x32xf32, #tpu.memory_space<vmem>>, vector<8x32xf32>
    %cst_11 = arith.constant dense<0.000000e+00> : vector<16x32xf32>
    %29 = tpu.matmul %26, %27, %cst_11 {dimension_numbers = #tpu.dot_dimension_numbers<[1], [0], [0], [1], [0, 0, 1, 1], [], []>} : vector<16x8xf32>, vector<8x32xf32>, vector<16x32xf32> -> vector<16x32xf32>
    %cst_12 = arith.constant dense<0.000000e+00> : vector<16x32xf32>
    %30 = tpu.matmul %2, %28, %cst_12 {dimension_numbers = #tpu.dot_dimension_numbers<[1], [0], [0], [1], [0, 0, 1, 1], [], []>} : vector<16x8xf32>, vector<8x32xf32>, vector<16x32xf32> -> vector<16x32xf32>
    %31 = arith.addf %29, %30 : vector<16x32xf32>
    %c384 = arith.constant 384 : index
    %c0_13 = arith.constant 0 : index
    %32 = vector.load %arg2[%c384, %c0_13] : memref<400x32xf32, #tpu.memory_space<vmem>>, vector<1x32xf32>
    %33 = vector.broadcast %32 : vector<1x32xf32> to vector<16x32xf32>
    %34 = arith.addf %31, %33 : vector<16x32xf32>
    %35 = math.tanh %34 : vector<16x32xf32>
    %cst_14 = arith.constant 5.65685415 : f32
    %36 = vector.broadcast %cst_14 : f32 to vector<16x32xf32>
    %37 = arith.mulf %35, %36 : vector<16x32xf32>
    %c304 = arith.constant 304 : index
    %c0_15 = arith.constant 0 : index
    %38 = vector.load %arg2[%c304, %c0_15] : memref<400x32xf32, #tpu.memory_space<vmem>>, vector<16x32xf32>
    %39 = arith.addf %37, %38 : vector<16x32xf32>
    %c16 = arith.constant 16 : index
    %c0_16 = arith.constant 0 : index
    %40 = vector.load %arg2[%c16, %c0_16] : memref<400x32xf32, #tpu.memory_space<vmem>>, vector<32x32xf32>
    %cst_17 = arith.constant dense<0.000000e+00> : vector<16x32xf32>
    %41 = tpu.matmul %39, %40, %cst_17 {dimension_numbers = #tpu.dot_dimension_numbers<[1], [0], [0], [1], [0, 0, 1, 1], [], []>} : vector<16x32xf32>, vector<32x32xf32>, vector<16x32xf32> -> vector<16x32xf32>
    %c385 = arith.constant 385 : index
    %c0_18 = arith.constant 0 : index
    %42 = vector.load %arg2[%c385, %c0_18] : memref<400x32xf32, #tpu.memory_space<vmem>>, vector<1x32xf32>
    %43 = vector.broadcast %42 : vector<1x32xf32> to vector<16x32xf32>
    %44 = arith.addf %41, %43 : vector<16x32xf32>
    %c48 = arith.constant 48 : index
    %c0_19 = arith.constant 0 : index
    %45 = vector.load %arg2[%c48, %c0_19] : memref<400x32xf32, #tpu.memory_space<vmem>>, vector<32x32xf32>
    %cst_20 = arith.constant dense<0.000000e+00> : vector<16x32xf32>
    %46 = tpu.matmul %39, %45, %cst_20 {dimension_numbers = #tpu.dot_dimension_numbers<[1], [0], [0], [1], [0, 0, 1, 1], [], []>} : vector<16x32xf32>, vector<32x32xf32>, vector<16x32xf32> -> vector<16x32xf32>
    %c386 = arith.constant 386 : index
    %c0_21 = arith.constant 0 : index
    %47 = vector.load %arg2[%c386, %c0_21] : memref<400x32xf32, #tpu.memory_space<vmem>>, vector<1x32xf32>
    %48 = vector.broadcast %47 : vector<1x32xf32> to vector<16x32xf32>
    %49 = arith.addf %46, %48 : vector<16x32xf32>
    %c80 = arith.constant 80 : index
    %c0_22 = arith.constant 0 : index
    %50 = vector.load %arg2[%c80, %c0_22] : memref<400x32xf32, #tpu.memory_space<vmem>>, vector<32x32xf32>
    %cst_23 = arith.constant dense<0.000000e+00> : vector<16x32xf32>
    %51 = tpu.matmul %39, %50, %cst_23 {dimension_numbers = #tpu.dot_dimension_numbers<[1], [0], [0], [1], [0, 0, 1, 1], [], []>} : vector<16x32xf32>, vector<32x32xf32>, vector<16x32xf32> -> vector<16x32xf32>
    %c387 = arith.constant 387 : index
    %c0_24 = arith.constant 0 : index
    %52 = vector.load %arg2[%c387, %c0_24] : memref<400x32xf32, #tpu.memory_space<vmem>>, vector<1x32xf32>
    %53 = vector.broadcast %52 : vector<1x32xf32> to vector<16x32xf32>
    %54 = arith.addf %51, %53 : vector<16x32xf32>
    %55 = vector.shape_cast %44 : vector<16x32xf32> to vector<2x8x32xf32>
    %56 = vector.shape_cast %49 : vector<16x32xf32> to vector<2x8x32xf32>
    %57 = vector.shape_cast %54 : vector<16x32xf32> to vector<2x8x32xf32>
    %c320 = arith.constant 320 : index
    %c0_25 = arith.constant 0 : index
    %58 = vector.load %arg2[%c320, %c0_25] : memref<400x32xf32, #tpu.memory_space<vmem>>, vector<64x32xf32>
    %59 = vector.shape_cast %58 : vector<64x32xf32> to vector<8x8x32xf32>
    %60 = tpu.concatenate %55, %55, %55, %55 in 0 : vector<2x8x32xf32>, vector<2x8x32xf32>, vector<2x8x32xf32>, vector<2x8x32xf32> -> vector<8x8x32xf32>
    %61 = arith.mulf %60, %59 : vector<8x8x32xf32>
    %62 = tpu.concatenate %56, %56, %56, %56 in 0 : vector<2x8x32xf32>, vector<2x8x32xf32>, vector<2x8x32xf32>, vector<2x8x32xf32> -> vector<8x8x32xf32>
    %63 = tpu.concatenate %57, %57, %57, %57 in 0 : vector<2x8x32xf32>, vector<2x8x32xf32>, vector<2x8x32xf32>, vector<2x8x32xf32> -> vector<8x8x32xf32>
    %64 = arith.mulf %63, %59 : vector<8x8x32xf32>
    %cst_26 = arith.constant dense<0.000000e+00> : vector<8x8x8xf32>
    %65 = tpu.matmul %61, %62, %cst_26 {dimension_numbers = #tpu.dot_dimension_numbers<[2], [2], [1], [1], [0, 0, 0, 1, 1, 1], [0], [0]>} : vector<8x8x32xf32>, vector<8x8x32xf32>, vector<8x8x8xf32> -> vector<8x8x8xf32>
    %cst_27 = arith.constant 0.353553385 : f32
    %66 = vector.broadcast %cst_27 : f32 to vector<8x8x8xf32>
    %67 = arith.mulf %65, %66 : vector<8x8x8xf32>
    %cst_28 = arith.constant dense<0xFF800000> : vector<8x8xf32>
    %68 = vector.multi_reduction <maximumf>, %67, %cst_28 [2] : vector<8x8x8xf32> to vector<8x8xf32>
    %69 = vector.shape_cast %68 : vector<8x8xf32> to vector<8x8x1xf32>
    %70 = vector.broadcast %69 : vector<8x8x1xf32> to vector<8x8x8xf32>
    %71 = arith.subf %67, %70 : vector<8x8x8xf32>
    %72 = math.exp %71 : vector<8x8x8xf32>
    %cst_29 = arith.constant dense<0.000000e+00> : vector<8x8xf32>
    %73 = vector.multi_reduction <add>, %72, %cst_29 [2] : vector<8x8x8xf32> to vector<8x8xf32>
    %74 = vector.shape_cast %73 : vector<8x8xf32> to vector<8x8x1xf32>
    %75 = vector.broadcast %74 : vector<8x8x1xf32> to vector<8x8x8xf32>
    %76 = arith.divf %72, %75 : vector<8x8x8xf32>
    %cst_30 = arith.constant dense<0.000000e+00> : vector<8x8x32xf32>
    %77 = tpu.matmul %76, %64, %cst_30 {dimension_numbers = #tpu.dot_dimension_numbers<[2], [1], [1], [2], [0, 0, 0, 1, 1, 2], [0], [0]>} : vector<8x8x8xf32>, vector<8x8x32xf32>, vector<8x8x32xf32> -> vector<8x8x32xf32>
    %78 = vector.shape_cast %77 : vector<8x8x32xf32> to vector<4x2x8x32xf32>
    %cst_31 = arith.constant dense<0.000000e+00> : vector<2x8x32xf32>
    %79 = vector.multi_reduction <add>, %78, %cst_31 [0] : vector<4x2x8x32xf32> to vector<2x8x32xf32>
    %80 = vector.shape_cast %79 : vector<2x8x32xf32> to vector<16x32xf32>
    %c112 = arith.constant 112 : index
    %c0_32 = arith.constant 0 : index
    %81 = vector.load %arg2[%c112, %c0_32] : memref<400x32xf32, #tpu.memory_space<vmem>>, vector<32x32xf32>
    %cst_33 = arith.constant dense<0.000000e+00> : vector<16x32xf32>
    %82 = tpu.matmul %80, %81, %cst_33 {dimension_numbers = #tpu.dot_dimension_numbers<[1], [0], [0], [1], [0, 0, 1, 1], [], []>} : vector<16x32xf32>, vector<32x32xf32>, vector<16x32xf32> -> vector<16x32xf32>
    %c388 = arith.constant 388 : index
    %c0_34 = arith.constant 0 : index
    %83 = vector.load %arg2[%c388, %c0_34] : memref<400x32xf32, #tpu.memory_space<vmem>>, vector<1x32xf32>
    %84 = vector.broadcast %83 : vector<1x32xf32> to vector<16x32xf32>
    %85 = arith.addf %82, %84 : vector<16x32xf32>
    %86 = arith.addf %39, %85 : vector<16x32xf32>
    %cst_35 = arith.constant dense<0.000000e+00> : vector<16xf32>
    %87 = vector.multi_reduction <add>, %86, %cst_35 [1] : vector<16x32xf32> to vector<16xf32>
    %88 = vector.shape_cast %87 : vector<16xf32> to vector<16x1xf32>
    %cst_36 = arith.constant 3.200000e+01 : f32
    %89 = vector.broadcast %cst_36 : f32 to vector<16x1xf32>
    %90 = arith.divf %88, %89 : vector<16x1xf32>
    %91 = vector.broadcast %90 : vector<16x1xf32> to vector<16x32xf32>
    %92 = arith.subf %86, %91 : vector<16x32xf32>
    %93 = arith.mulf %92, %92 : vector<16x32xf32>
    %cst_37 = arith.constant dense<0.000000e+00> : vector<16xf32>
    %94 = vector.multi_reduction <add>, %93, %cst_37 [1] : vector<16x32xf32> to vector<16xf32>
    %95 = vector.shape_cast %94 : vector<16xf32> to vector<16x1xf32>
    %cst_38 = arith.constant 3.200000e+01 : f32
    %96 = vector.broadcast %cst_38 : f32 to vector<16x1xf32>
    %97 = arith.divf %95, %96 : vector<16x1xf32>
    %98 = vector.broadcast %90 : vector<16x1xf32> to vector<16x32xf32>
    %99 = arith.subf %86, %98 : vector<16x32xf32>
    %cst_39 = arith.constant 9.99999974E-6 : f32
    %100 = vector.broadcast %cst_39 : f32 to vector<16x1xf32>
    %101 = arith.addf %97, %100 : vector<16x1xf32>
    %102 = math.rsqrt %101 : vector<16x1xf32>
    %103 = vector.broadcast %102 : vector<16x1xf32> to vector<16x32xf32>
    %104 = arith.mulf %99, %103 : vector<16x32xf32>
    %c390 = arith.constant 390 : index
    %c0_40 = arith.constant 0 : index
    %105 = vector.load %arg2[%c390, %c0_40] : memref<400x32xf32, #tpu.memory_space<vmem>>, vector<1x32xf32>
    %106 = vector.broadcast %105 : vector<1x32xf32> to vector<16x32xf32>
    %107 = arith.mulf %104, %106 : vector<16x32xf32>
    %c391 = arith.constant 391 : index
    %c0_41 = arith.constant 0 : index
    %108 = vector.load %arg2[%c391, %c0_41] : memref<400x32xf32, #tpu.memory_space<vmem>>, vector<1x32xf32>
    %109 = vector.broadcast %108 : vector<1x32xf32> to vector<16x32xf32>
    %110 = arith.addf %107, %109 : vector<16x32xf32>
    %c0_42 = arith.constant 0 : index
    %c0_43 = arith.constant 0 : index
    %111 = vector.load %arg3[%c0_42, %c0_43] : memref<40x128xf32, #tpu.memory_space<vmem>>, vector<32x128xf32>
    %cst_44 = arith.constant dense<0.000000e+00> : vector<16x128xf32>
    %112 = tpu.matmul %110, %111, %cst_44 {dimension_numbers = #tpu.dot_dimension_numbers<[1], [0], [0], [1], [0, 0, 1, 1], [], []>} : vector<16x32xf32>, vector<32x128xf32>, vector<16x128xf32> -> vector<16x128xf32>
    %c32 = arith.constant 32 : index
    %c0_45 = arith.constant 0 : index
    %113 = vector.load %arg3[%c32, %c0_45] : memref<40x128xf32, #tpu.memory_space<vmem>>, vector<1x128xf32>
    %114 = vector.broadcast %113 : vector<1x128xf32> to vector<16x128xf32>
    %115 = arith.addf %112, %114 : vector<16x128xf32>
    %cst_46 = arith.constant 0.000000e+00 : f32
    %116 = vector.broadcast %cst_46 : f32 to vector<16x128xf32>
    %117 = arith.maximumf %115, %116 : vector<16x128xf32>
    %c144 = arith.constant 144 : index
    %c0_47 = arith.constant 0 : index
    %118 = vector.load %arg2[%c144, %c0_47] : memref<400x32xf32, #tpu.memory_space<vmem>>, vector<128x32xf32>
    %cst_48 = arith.constant dense<0.000000e+00> : vector<16x32xf32>
    %119 = tpu.matmul %117, %118, %cst_48 {dimension_numbers = #tpu.dot_dimension_numbers<[1], [0], [0], [1], [0, 0, 1, 1], [], []>} : vector<16x128xf32>, vector<128x32xf32>, vector<16x32xf32> -> vector<16x32xf32>
    %c389 = arith.constant 389 : index
    %c0_49 = arith.constant 0 : index
    %120 = vector.load %arg2[%c389, %c0_49] : memref<400x32xf32, #tpu.memory_space<vmem>>, vector<1x32xf32>
    %121 = vector.broadcast %120 : vector<1x32xf32> to vector<16x32xf32>
    %122 = arith.addf %119, %121 : vector<16x32xf32>
    %123 = arith.addf %110, %122 : vector<16x32xf32>
    %cst_50 = arith.constant dense<0.000000e+00> : vector<16xf32>
    %124 = vector.multi_reduction <add>, %123, %cst_50 [1] : vector<16x32xf32> to vector<16xf32>
    %125 = vector.shape_cast %124 : vector<16xf32> to vector<16x1xf32>
    %cst_51 = arith.constant 3.200000e+01 : f32
    %126 = vector.broadcast %cst_51 : f32 to vector<16x1xf32>
    %127 = arith.divf %125, %126 : vector<16x1xf32>
    %128 = vector.broadcast %127 : vector<16x1xf32> to vector<16x32xf32>
    %129 = arith.subf %123, %128 : vector<16x32xf32>
    %130 = arith.mulf %129, %129 : vector<16x32xf32>
    %cst_52 = arith.constant dense<0.000000e+00> : vector<16xf32>
    %131 = vector.multi_reduction <add>, %130, %cst_52 [1] : vector<16x32xf32> to vector<16xf32>
    %132 = vector.shape_cast %131 : vector<16xf32> to vector<16x1xf32>
    %cst_53 = arith.constant 3.200000e+01 : f32
    %133 = vector.broadcast %cst_53 : f32 to vector<16x1xf32>
    %134 = arith.divf %132, %133 : vector<16x1xf32>
    %135 = vector.broadcast %127 : vector<16x1xf32> to vector<16x32xf32>
    %136 = arith.subf %123, %135 : vector<16x32xf32>
    %cst_54 = arith.constant 9.99999974E-6 : f32
    %137 = vector.broadcast %cst_54 : f32 to vector<16x1xf32>
    %138 = arith.addf %134, %137 : vector<16x1xf32>
    %139 = math.rsqrt %138 : vector<16x1xf32>
    %140 = vector.broadcast %139 : vector<16x1xf32> to vector<16x32xf32>
    %141 = arith.mulf %136, %140 : vector<16x32xf32>
    %c392 = arith.constant 392 : index
    %c0_55 = arith.constant 0 : index
    %142 = vector.load %arg2[%c392, %c0_55] : memref<400x32xf32, #tpu.memory_space<vmem>>, vector<1x32xf32>
    %143 = vector.broadcast %142 : vector<1x32xf32> to vector<16x32xf32>
    %144 = arith.mulf %141, %143 : vector<16x32xf32>
    %c393 = arith.constant 393 : index
    %c0_56 = arith.constant 0 : index
    %145 = vector.load %arg2[%c393, %c0_56] : memref<400x32xf32, #tpu.memory_space<vmem>>, vector<1x32xf32>
    %146 = vector.broadcast %145 : vector<1x32xf32> to vector<16x32xf32>
    %147 = arith.addf %144, %146 : vector<16x32xf32>
    %c272 = arith.constant 272 : index
    %c0_57 = arith.constant 0 : index
    %148 = vector.load %arg2[%c272, %c0_57] : memref<400x32xf32, #tpu.memory_space<vmem>>, vector<32x32xf32>
    %149 = vector.shape_cast %148 : vector<32x32xf32> to vector<2x16x32xf32>
    %150 = vector.shape_cast %147 : vector<16x32xf32> to vector<1x16x32xf32>
    %151 = vector.broadcast %150 : vector<1x16x32xf32> to vector<2x16x32xf32>
    %152 = arith.mulf %151, %149 : vector<2x16x32xf32>
    %cst_58 = arith.constant dense<0.000000e+00> : vector<2x16xf32>
    %153 = vector.multi_reduction <add>, %152, %cst_58 [2] : vector<2x16x32xf32> to vector<2x16xf32>
    %154 = vector.shape_cast %153 : vector<2x16xf32> to vector<2x16x1xf32>
    %cst_59 = arith.constant dense<0.000000e+00> : vector<2x1xf32>
    %155 = vector.multi_reduction <add>, %154, %cst_59 [1] : vector<2x16x1xf32> to vector<2x1xf32>
    %c394 = arith.constant 394 : index
    %c0_60 = arith.constant 0 : index
    %156 = vector.load %arg2[%c394, %c0_60] : memref<400x32xf32, #tpu.memory_space<vmem>>, vector<1x32xf32>
    %157 = vector.extract_strided_slice %156 {offsets = [0, 0], sizes = [1, 1], strides = [1, 1]} : vector<1x32xf32> to vector<1x1xf32>
    %158 = vector.broadcast %157 : vector<1x1xf32> to vector<2x1xf32>
    %159 = arith.addf %155, %158 : vector<2x1xf32>
    %c0_61 = arith.constant 0 : index
    %c0_62 = arith.constant 0 : index
    %c0_63 = arith.constant 0 : index
    %160 = vector.load %arg4[%c0_61, %c0_62, %c0_63] : memref<1x2x1xf32, #tpu.memory_space<vmem>>, vector<1x2x1xf32>
    %161 = vector.shape_cast %160 : vector<1x2x1xf32> to vector<2x1xf32>
    %162 = vector.shape_cast %159 : vector<2x1xf32> to vector<1x2x1xf32>
    tpu.vector_store %arg4[%c0_61, %c0_62, %c0_63], %162 {strides = array<i32>} : memref<1x2x1xf32, #tpu.memory_space<vmem>>, vector<1x2x1xf32>,
    return
  }
  func.func @transform_0(%arg0: i32) -> (i32, i32, i32, i32) {
    %c0_i32 = arith.constant 0 : i32
    %c0_i32_0 = arith.constant 0 : i32
    %c0_i32_1 = arith.constant 0 : i32
    %c0_i32_2 = arith.constant 0 : i32
    return %arg0, %c0_i32, %c0_i32_0, %c0_i32_1 : i32, i32, i32, i32
  }
  func.func @transform_1(%arg0: i32) -> (i32, i32) {
    %c0_i32 = arith.constant 0 : i32
    %c0_i32_0 = arith.constant 0 : i32
    %c0_i32_1 = arith.constant 0 : i32
    return %c0_i32, %c0_i32_0 : i32, i32
  }
  func.func @transform_2(%arg0: i32) -> (i32, i32) {
    %c0_i32 = arith.constant 0 : i32
    %c0_i32_0 = arith.constant 0 : i32
    %c0_i32_1 = arith.constant 0 : i32
    return %c0_i32, %c0_i32_0 : i32, i32
  }
  func.func @transform_3(%arg0: i32) -> (i32, i32, i32) {
    %c0_i32 = arith.constant 0 : i32
    %c0_i32_0 = arith.constant 0 : i32
    %c0_i32_1 = arith.constant 0 : i32
    return %arg0, %c0_i32, %c0_i32_0 : i32, i32, i32
  }
}

</mosaic_0001>

<bundles_post_ra>
// kernel: convbert_forward.1
= control target key start
LH: loop header
LB: loop body
LE: loop exit
PB: predicated region body
PF: predicated region fallthrough
CT: control target
= control target key end

     0   :  { %s2834_s12 = smov 0   ;;  %s3209_s0 = inlined_call_operand.vmem [shape: f32[4,2,8,8], index: 0, kind: input, shape index: {}]   ;;  %s3210_s1 = inlined_call_operand.vmem [shape: f32[400,32], index: 1, kind: input, shape index: {}]   ;;  %s3211_s2 = inlined_call_operand.vmem [shape: f32[40,128], index: 2, kind: input, shape index: {}]   ;;  %s3212_s3 = inlined_call_operand.vmem [shape: f32[4,2,1], index: 3, kind: output, shape index: {}]  }
   0x1 LB: > { %s2423_s13 = sadd.s32 4294967295, %s2810_s12   ;;  %p2427_p0 = scmp.ge.s32.totalorder %s2810_s12, 1  ;;  %s2810_s12 = sphi %s2834_s12, %s13_s12  }
   0x2   : > { %p137_p1 = scmp.lt.s32.totalorder %s2810_s12, 5 }
   0x4   : > { %p138_p2 = pnand %p2427_p0, %p137_p1 }
   0x5   : > { %p160_p3 = scmp.lt.s32.totalorder (!%p138_p2), %s2423_s13, 3 }
   0x6   : > { %141 = sbr.rel (%p138_p2) target bundleno = 2545 (0x9f1), region = 32 }
   0xb   : > { %v212_v0 = vld [vmem:[%s3210_s1 + $0x8] sm:$0xff]  ;;  %v211_v1 = vld [vmem:[%s3210_s1] sm:$0xff]  ;;  %v173_v2 = vlaneseq  ;;  %s3214_s13 = smov (!%p160_p3, %s2423_s13), 3  ;;  %vm213_vm0 = vcmask 64512   ;;  %v392_v17 = vld [vmem:[%s3210_s1 + $0x18] sm:$0xff]  ;;  %vm400_vm4 = vcmask 261120  }
   0xc   : > { %2570 = vmatprep.subr.mxu0 %v212_v0  ;;  %2575 = vmatprep.subr.mxu1 %v211_v1  ;;  %s2483_s18 = sshll.u32 %s3214_s13, 4  ;;  %v394_v15 = vld [vmem:[%s3210_s1 + $0x28] sm:$0xff]  ;;  %v393_v16 = vld [vmem:[%s3210_s1 + $0x20] sm:$0xff]  ;;  %v391_v18 = vld [vmem:[%s3210_s1 + $0x10] sm:$0xff]  ;;  %v2812_v44 = vmov 0.0   ;;  %vm2813_vm5 = vmmov 0  }
   0xd   : > { %2571 = vmatpush3.msra.mxu0 %v212_v0  ;;  %2576 = vmatpush3.msra.mxu1 %v211_v1  ;;  %v174_v3 = vshrl.u32 %v173_v2, 7  ;;  %s164_s21 = scalar_lea.vmem %s3209_s0, %s2483_s18  ;;  %v485_v19 = vld [vmem:[%s3210_s1 + $0x48] sm:$0xff]  ;;  %v2435_v22 = vld [vmem:[%s3210_s1 + $0x180] ss:$0 sm:$0xff]  ;;  %v387_v32 = vld [vmem:[%s3210_s1 + $0x130] sm:$0xff]  ;;  %vm2365_vm6 = vcmask 1041409  }
   0xe   : > { %v169_v6 = vld [vmem:[%s164_s21] sm:$0xff]  ;;  %v170_v7 = vld [vmem:[%s164_s21 + $0x8] sm:$0xff]  ;;  %2580 = vmatprep.subr.mxu1 %v394_v15  ;;  %v388_v33 = vld [vmem:[%s3210_s1 + $0x138] sm:$0xff]  ;;  %2623 = vmatprep.subr.mxu0 %v2812_v44  ;;  %s2430_s21 = sshll.u32 %s3214_s13, 1  ;;  %vm2368_vm7 = vcmask 1024  }
   0xf   : > { %v183_v4 = vand.u32 7, %v174_v3  ;;  %v178_v5 = vadd.s32 8, %v174_v3  ;;  %vm175_vm1 = vcmp.lt.s32.totalorder %v174_v3, 1  ;;  %v171_v9 = vrot.slane %v169_v6, 7  ;;  %2572 = vmatprep.mubr.msk.f32.mxu0 %vm213_vm0, %v169_v6  ;;  %v484_v37 = vld [vmem:[%s3210_s1 + $0x40] sm:$0xff]  ;;  %v483_v38 = vld [vmem:[%s3210_s1 + $0x38] sm:$0xff]  ;;  %s168_s24 = scalar_lea.vmem %s3212_s3, %s2430_s21 }
  0x10   : > { %v172_v10 = vrot.slane %v170_v7, 7  ;;  %2573 = vmatmul.mubr.msk.f32.vlgmr.msra.gmra.mxu0 %vm213_vm0, %v170_v7  ;;  %v482_v39 = vld [vmem:[%s3210_s1 + $0x30] sm:$0xff]  ;;  %v569_v40 = vld [vmem:[%s3210_s1 + $0x68] sm:$0xff]  ;;  %v568_v41 = vld [vmem:[%s3210_s1 + $0x60] sm:$0xff] }
  0x11   : > { %v190_v8 = vand.u32 7, %v178_v5  ;;  %vm203_vm2 = vcmp.eq.s32.totalorder %v183_v4, 0  ;;  %v567_v42 = vld [vmem:[%s3210_s1 + $0x58] sm:$0xff]  ;;  %v566_v43 = vld [vmem:[%s3210_s1 + $0x50] sm:$0xff]  ;;  %2625 = vmatprep.mubr.msk.f32.mxu0 %vm2813_vm5, %v2812_v44  ;;  %v2436_v48 = vld [vmem:[%s3210_s1 + $0x181] ss:$0 sm:$0xff] }
  0x12   : > { %v177_v11 = vsel %vm175_vm1, %v172_v10, %v171_v9  ;;  %v176_v12 = vsel %vm175_vm1, %v171_v9, %v172_v10  ;;  %v2439_v50 = vld [vmem:[%s3210_s1 + $0x182] ss:$0 sm:$0xff]  ;;  %v652_v53 = vld [vmem:[%s3210_s1 + $0x150] sm:$0xff]  ;;  %v2442_v58 = vld [vmem:[%s3210_s1 + $0x183] ss:$0 sm:$0xff] }
  0x13   : > { %vm204_vm3 = vcmp.eq.s32.totalorder %v190_v8, 0  ;;  %v209_v13 = vsel %vm203_vm2, 0.0, %v177_v11  ;;  %v650_v52 = vld [vmem:[%s3210_s1 + $0x140] sm:$0xff]  ;;  %v651_v59 = vld [vmem:[%s3210_s1 + $0x148] sm:$0xff]  ;;  %v653_v0 = vld [vmem:[%s3210_s1 + $0x158] sm:$0xff] }
  0x14   : > { %v210_v14 = vsel %vm204_vm3, 0.0, %v176_v12  ;;  %2577 = vmatprep.mubr.msk.f32.mxu1 %vm213_vm0, %v209_v13  ;;  %v654_v60 = vld [vmem:[%s3210_s1 + $0x160] sm:$0xff]  ;;  %v655_v4 = vld [vmem:[%s3210_s1 + $0x168] sm:$0xff]  ;;  %v657_v5 = vld [vmem:[%s3210_s1 + $0x178] sm:$0xff] }
  0x15   : > { %2578 = vmatmul.mubr.msk.f32.vlgmr.msra.gmra.mxu1 %vm213_vm0, %v210_v14  ;;  %v656_v6 = vld [vmem:[%s3210_s1 + $0x170] sm:$0xff] }
  0x16   : > { %2581 = vmatpush3.msra.mxu1 %v394_v15 }
  0x17   : > { %2582 = vmatprep.subr.mxu1 %v393_v16 }
  0x18   : > { %2583 = vmatpush3.msra.mxu1 %v393_v16 }
  0x19   : > { %2584 = vmatprep.subr.mxu1 %v392_v17 }
  0x1a   : > { %2585 = vmatpush3.msra.mxu1 %v392_v17 }
  0x1b   : > { %2586 = vmatprep.subr.mxu1 %v391_v18 }
  0x1c   : > { %2587 = vmatpush3.msra.mxu1 %v391_v18 }
  0x1d   : > { %2591 = vmatprep.subr.mxu1 %v485_v19 }
  0xd0   : > { %v2574_v20 = vpop.f32.mrf.mxu0 }
  0xd2   : > { %v286_v24 = vpop.f32.mrf.mxu0 }
  0xd5   : > { %v2579_v21 = vpop.f32.mrf.mxu1 }
  0xd6   : > { %v373_v23 = vadd.f32 %v2579_v21, %v2574_v20 }
  0xd7   : > { %v367_v25 = vpop.f32.mrf.mxu1 }
  0xd8   : > { %v382_v26 = vadd.f32 %v2435_v22, %v373_v23  ;;  %v368_v27 = vadd.f32 %v367_v25, %v286_v24 }
  0xda   : > { %2760 = vtanh.f32 %v382_v26  ;;  %v381_v28 = vadd.f32 %v2435_v22, %v368_v27 }
  0xdc   : > { %2762 = vtanh.f32 %v381_v28 }
  0xe7   : > { %v2761_v29 = vpop.eup %2760 }
  0xe8   : > { %v386_v31 = vmul.f32 5.656854, %v2761_v29 }
  0xe9   : > { %v2763_v30 = vpop.eup %2762 }
  0xea   : > { %v385_v34 = vmul.f32 5.656854, %v2763_v30  ;;  %v2884_v36 = vadd.f32 %v388_v33, %v386_v31 }
  0xec   : > { %v2882_v35 = vadd.f32 %v387_v32, %v385_v34 }
  0xee   : > { %2588 = vmatprep.mubr.msk.f32.mxu1 %vm400_vm4, %v2882_v35 }
  0xef   : > { %2589 = vmatmul.mubr.msk.f32.vlgmr.msra.gmra.mxu1 %vm400_vm4, %v2884_v36 }
  0xf0   : > { %2592 = vmatpush3.msra.mxu1 %v485_v19  ;;  %2599 = vmatprep.mubr.msk.f32.mxu1 %vm400_vm4, %v2882_v35 }
  0xf1   : > { %2593 = vmatprep.subr.mxu1 %v484_v37 }
  0xf2   : > { %2594 = vmatpush3.msra.mxu1 %v484_v37 }
  0xf3   : > { %2595 = vmatprep.subr.mxu1 %v483_v38 }
  0xf4   : > { %2596 = vmatpush3.msra.mxu1 %v483_v38 }
  0xf5   : > { %2597 = vmatprep.subr.mxu1 %v482_v39 }
  0xf6   : > { %2598 = vmatpush3.msra.mxu1 %v482_v39 }
  0xf7   : > { %2600 = vmatmul.mubr.msk.f32.vlgmr.msra.gmra.mxu1 %vm400_vm4, %v2884_v36  ;;  %2602 = vmatprep.subr.mxu1 %v569_v40 }
  0xf8   : > { %2603 = vmatpush3.msra.mxu1 %v569_v40  ;;  %2610 = vmatprep.mubr.msk.f32.mxu1 %vm400_vm4, %v2882_v35 }
  0xf9   : > { %2604 = vmatprep.subr.mxu1 %v568_v41 }
  0xfa   : > { %2605 = vmatpush3.msra.mxu1 %v568_v41 }
  0xfb   : > { %2606 = vmatprep.subr.mxu1 %v567_v42 }
  0xfc   : > { %2607 = vmatpush3.msra.mxu1 %v567_v42 }
  0xfd   : > { %2608 = vmatprep.subr.mxu1 %v566_v43 }
  0xfe   : > { %2609 = vmatpush3.msra.mxu1 %v566_v43 }
  0xff   : > { %2611 = vmatmul.mubr.msk.f32.vlgmr.msra.gmra.mxu1 %vm400_vm4, %v2884_v36  ;;  %2613 = vmatprep.subr.mxu1 %v2812_v44 }
 0x100   : > { %2615 = vmatprep.mubr.msk.f32.mxu1 %vm2813_vm5, %v2812_v44 }
 0x1af   : > { %v2590_v45 = vpop.f32.mrf.mxu1 }
 0x1b0   : > { %v479_v55 = vadd.f32 %v2590_v45, %v2436_v48 }
 0x1b1   : > { %v473_v46 = vpop.f32.mrf.mxu1 }
 0x1b2   : > { %v474_v49 = vadd.f32 %v2436_v48, %v473_v46  ;;  %v659_v1 = vmul.f32 %v651_v59, %v479_v55  ;;  %v661_v13 = vmul.f32 %v653_v0, %v479_v55  ;;  %v663_v17 = vmul.f32 %v655_v4, %v479_v55 }
 0x1b3   : > { %v665_v18 = vmul.f32 %v657_v5, %v479_v55 }
 0x1b4   : > { %v658_v56 = vmul.f32 %v650_v52, %v474_v49  ;;  %v660_v57 = vmul.f32 %v652_v53, %v474_v49  ;;  %v662_v2 = vmul.f32 %v654_v60, %v474_v49  ;;  %v664_v14 = vmul.f32 %v656_v6, %v474_v49 }
 0x1b7   : > { %v2601_v47 = vpop.f32.mrf.mxu1 }
 0x1b8   : > { %v563_v61 = vadd.f32 %v2601_v47, %v2439_v50 }
 0x1b9   : > { %v557_v51 = vpop.f32.mrf.mxu1 }
 0x1ba   : > { %v558_v54 = vadd.f32 %v2439_v50, %v557_v51 }
 0x1bc   : > { %2614 = vmatpush3.xpose.msk.msra.mxu1 %vm400_vm4, %v558_v54  ;;  %2624 = vmatpush3.xpose.msk.msra.mxu0 %vm400_vm4, %v558_v54 }
 0x1bd   : > { %2618 = vmatprep.subr.mxu1 %v2812_v44  ;;  %2633 = vmatprep.subr.mxu0 %v2812_v44 }
 0x1bf   : > { %v2612_v62 = vpop.f32.mrf.mxu1  ;;  %2616 = vmatmul.mubr.msk.f32.vlgmr.msra.gmra.mxu1 %vm400_vm4, %v658_v56  ;;  %2626 = vmatmul.mubr.msk.f32.vlgmr.msra.gmra.mxu0 %vm400_vm4, %v660_v57 }
 0x1c0   : > { %v647_v63 = vadd.f32 %v2612_v62, %v2442_v58  ;;  %2619 = vmatpush3.xpose.msk.msra.mxu1 %vm400_vm4, %v563_v61  ;;  %2634 = vmatpush3.xpose.msk.msra.mxu0 %vm400_vm4, %v558_v54 }
 0x1c1   : > { %v641_v3 = vpop.f32.mrf.mxu1  ;;  %2620 = vmatprep.mubr.msk.f32.mxu1 %vm2813_vm5, %v2812_v44  ;;  %2635 = vmatprep.mubr.msk.f32.mxu0 %vm2813_vm5, %v2812_v44 }
 0x1c2   : > { %v642_v7 = vadd.f32 %v2442_v58, %v641_v3  ;;  %2628 = vmatprep.subr.mxu1 %v2812_v44  ;;  %2643 = vmatprep.subr.mxu0 %v2812_v44  ;;  %v2972_v8 = vmul.f32 %v653_v0, %v647_v63  ;;  %v2976_v9 = vmul.f32 %v655_v4, %v647_v63 }
 0x1c3   : > { %2621 = vmatmul.mubr.msk.f32.vlgmr.msra.gmra.mxu1 %vm400_vm4, %v659_v1  ;;  %2636 = vmatmul.mubr.msk.f32.vlgmr.msra.gmra.mxu0 %vm400_vm4, %v662_v2  ;;  %v2978_v10 = vmul.f32 %v657_v5, %v647_v63  ;;  %v667_v19 = vmul.f32 %v651_v59, %v647_v63 }
 0x1c4   : > { %2629 = vmatpush3.xpose.msk.msra.mxu1 %vm400_vm4, %v563_v61  ;;  %2644 = vmatpush3.xpose.msk.msra.mxu0 %vm400_vm4, %v558_v54  ;;  %v2982_v11 = vmul.f32 %v652_v53, %v642_v7  ;;  %v2984_v12 = vmul.f32 %v654_v60, %v642_v7  ;;  %v2990_v15 = vmul.f32 %v656_v6, %v642_v7 }
 0x1c5   : > { %2630 = vmatprep.mubr.msk.f32.mxu1 %vm2813_vm5, %v2812_v44  ;;  %2645 = vmatprep.mubr.msk.f32.mxu0 %vm2813_vm5, %v2812_v44  ;;  %v666_v16 = vmul.f32 %v650_v52, %v642_v7 }
 0x1c6   : > { %2638 = vmatprep.subr.mxu1 %v2812_v44  ;;  %2653 = vmatprep.subr.mxu0 %v2812_v44 }
 0x1c7   : > { %2631 = vmatmul.mubr.msk.f32.vlgmr.msra.gmra.mxu1 %vm400_vm4, %v661_v13  ;;  %2646 = vmatmul.mubr.msk.f32.vlgmr.msra.gmra.mxu0 %vm400_vm4, %v664_v14 }
 0x1c8   : > { %2639 = vmatpush3.xpose.msk.msra.mxu1 %vm400_vm4, %v563_v61  ;;  %2654 = vmatpush3.msra.mxu0 %v666_v16 }
 0x1c9   : > { %2640 = vmatprep.mubr.msk.f32.mxu1 %vm2813_vm5, %v2812_v44  ;;  %2648 = vmatprep.subr.mxu1 %v2812_v44 }
 0x1ca   : > { %2655 = vmatprep.mubr.msk.f32.mxu0 %vm2813_vm5, %v2812_v44  ;;  %2663 = vmatprep.subr.mxu0 %v2812_v44 }
 0x1cb   : > { %2641 = vmatmul.mubr.msk.f32.vlgmr.msra.gmra.mxu1 %vm400_vm4, %v663_v17 }
 0x1cc   : > { %2649 = vmatpush3.xpose.msk.msra.mxu1 %vm400_vm4, %v563_v61  ;;  %2650 = vmatprep.mubr.msk.f32.mxu1 %vm2813_vm5, %v2812_v44 }
 0x1cd   : > { %2658 = vmatprep.subr.mxu1 %v2812_v44 }
 0x1cf   : > { %2651 = vmatmul.mubr.msk.f32.vlgmr.msra.gmra.mxu1 %vm400_vm4, %v665_v18 }
 0x1d0   : > { %2659 = vmatpush3.msra.mxu1 %v667_v19  ;;  %2660 = vmatprep.mubr.msk.f32.mxu1 %vm2813_vm5, %v2812_v44 }
 0x1d1   : > { %2668 = vmatprep.subr.mxu1 %v2812_v44 }
 0x27f   : > { %v746_v20 = vpop.f32.mrf.mxu1  ;;  %v895_v21 = vpop.f32.mrf.mxu0 }
 0x280   : > { %v1264_v22 = vmul.f32 0.35355338, %v746_v20  ;;  %v1266_v23 = vmul.f32 0.35355338, %v895_v21 }
 0x281   : > { %v2617_v24 = vpop.f32.mrf.mxu1  ;;  %v2627_v25 = vpop.f32.mrf.mxu0 }
 0x282   : > { %v1278_v26 = vsel %vm213_vm0, %v1266_v23, -inf  ;;  %v1272_v27 = vsel %vm213_vm0, %v1264_v22, -inf }
 0x283   : > { %1279 = vmax.xlane.f32.xlu1 %v1278_v26  ;;  %v1041_v28 = vpop.f32.mrf.mxu0  ;;  %1273 = vmax.xlane.f32.xlu0 %v1272_v27  ;;  %v822_v29 = vpop.f32.mrf.mxu1 }
 0x284   : > { %v1265_v30 = vmul.f32 0.35355338, %v822_v29  ;;  %v1268_v33 = vmul.f32 0.35355338, %v1041_v28 }
 0x285   : > { %v2622_v31 = vpop.f32.mrf.mxu1  ;;  %v2637_v32 = vpop.f32.mrf.mxu0 }
 0x286   : > { %v1275_v34 = vsel %vm213_vm0, %v1265_v30, -inf  ;;  %v1284_v43 = vsel %vm213_vm0, %v1268_v33, -inf }
 0x287   : > { %v1187_v37 = vpop.f32.mrf.mxu0  ;;  %1276 = vmax.xlane.f32.xlu0 %v1275_v34  ;;  %v968_v38 = vpop.f32.mrf.mxu1 }
 0x288   : > { %v1267_v39 = vmul.f32 0.35355338, %v968_v38  ;;  %v1270_v42 = vmul.f32 0.35355338, %v1187_v37 }
 0x289   : > { %v2632_v40 = vpop.f32.mrf.mxu1  ;;  %v2647_v41 = vpop.f32.mrf.mxu0 }
 0x28a   : > { %v1281_v45 = vsel %vm213_vm0, %v1267_v39, -inf  ;;  %v1290_v49 = vsel %vm213_vm0, %v1270_v42, -inf }
 0x28b   : > { %1285 = vmax.xlane.f32.xlu0 %v1284_v43  ;;  %1282 = vmax.xlane.f32.xlu1 %v1281_v45  ;;  %v1114_v46 = vpop.f32.mrf.mxu1 }
 0x28c   : > { %v1269_v47 = vmul.f32 0.35355338, %v1114_v46 }
 0x28d   : > { %v2642_v48 = vpop.f32.mrf.mxu1 }
 0x28e   : > { %v1287_v50 = vsel %vm213_vm0, %v1269_v47, -inf }
 0x28f   : > { %1291 = vmax.xlane.f32.xlu0 %v1290_v49  ;;  %1288 = vmax.xlane.f32.xlu1 %v1287_v50  ;;  %v1260_v51 = vpop.f32.mrf.mxu1 }
 0x290   : > { %v1271_v52 = vmul.f32 0.35355338, %v1260_v51 }
 0x291   : > { %v2652_v53 = vpop.f32.mrf.mxu1 }
 0x292   : > { %v1293_v54 = vsel %vm213_vm0, %v1271_v52, -inf }
 0x293   : > { %1294 = vmax.xlane.f32.xlu1 %v1293_v54 }
 0x30c   : > { %v1280_v55 = vpop.xlane.xlu1 %1279  ;;  %v1274_v56 = vpop.xlane.xlu0 %1273 }
 0x30d   : > { %v1298_v57 = vsub.f32 %v1266_v23, %v1280_v55  ;;  %v1296_v58 = vsub.f32 %v1264_v22, %v1274_v56 }
 0x30f   : > { %v1304_v59 = vmul.f32 1.442695, %v1296_v58  ;;  %v1308_v60 = vmul.f32 1.442695, %v1298_v57 }
 0x310   : > { %v1277_v61 = vpop.xlane.xlu0 %1276 }
 0x311   : > { %v1297_v62 = vsub.f32 %v1265_v30, %v1277_v61  ;;  %2764 = vpow2.f32 %v1304_v59 }
 0x312   : > { %2766 = vpow2.f32 %v1308_v60  ;;  %v1960_v60 = vld [vmem:[%s3210_s1 + $0x80] sm:$0xff] }
 0x313   : > { %v1306_v63 = vmul.f32 1.442695, %v1297_v62 }
 0x314   : > { %v1286_v0 = vpop.xlane.xlu0 %1285  ;;  %v1283_v1 = vpop.xlane.xlu1 %1282 }
 0x315   : > { %2768 = vpow2.f32 %v1306_v63  ;;  %v1300_v2 = vsub.f32 %v1268_v33, %v1286_v0  ;;  %v1299_v3 = vsub.f32 %v1267_v39, %v1283_v1 }
 0x317   : > { %v1312_v4 = vmul.f32 1.442695, %v1300_v2  ;;  %v1310_v5 = vmul.f32 1.442695, %v1299_v3 }
 0x318   : > { %v1292_v6 = vpop.xlane.xlu0 %1291  ;;  %v1289_v7 = vpop.xlane.xlu1 %1288 }
 0x319   : > { %2770 = vpow2.f32 %v1312_v4  ;;  %v1302_v13 = vsub.f32 %v1270_v42, %v1292_v6  ;;  %v1301_v14 = vsub.f32 %v1269_v47, %v1289_v7 }
 0x31a   : > { %2772 = vpow2.f32 %v1310_v5 }
 0x31b   : > { %v1316_v16 = vmul.f32 1.442695, %v1302_v13  ;;  %v1314_v17 = vmul.f32 1.442695, %v1301_v14 }
 0x31c   : > { %v1295_v18 = vpop.xlane.xlu1 %1294 }
 0x31d   : > { %2774 = vpow2.f32 %v1316_v16  ;;  %v1303_v19 = vsub.f32 %v1271_v52, %v1295_v18 }
 0x31e   : > { %2776 = vpow2.f32 %v1314_v17  ;;  %v2765_v20 = vpop.eup %2764 }
 0x31f   : > { %v1318_v21 = vmul.f32 1.442695, %v1303_v19  ;;  %v1320_v22 = vsel %vm213_vm0, %v2765_v20, 0.0  ;;  %v2767_v23 = vpop.eup %2766 }
 0x320   : > { %1321 = vadd.xlane.f32.xlu0 %v1320_v22  ;;  %v1326_v26 = vsel %vm213_vm0, %v2767_v23, 0.0 }
 0x321   : > { %2778 = vpow2.f32 %v1318_v21 }
 0x322   : > { %v2769_v24 = vpop.eup %2768 }
 0x323   : > { %v1323_v25 = vsel %vm213_vm0, %v2769_v24, 0.0 }
 0x324   : > { %1324 = vadd.xlane.f32.xlu1 %v1323_v25  ;;  %1327 = vadd.xlane.f32.xlu0 %v1326_v26 }
 0x326   : > { %v2771_v27 = vpop.eup %2770 }
 0x327   : > { %v2773_v28 = vpop.eup %2772  ;;  %v1332_v29 = vsel %vm213_vm0, %v2771_v27, 0.0 }
 0x328   : > { %v1329_v30 = vsel %vm213_vm0, %v2773_v28, 0.0  ;;  %1333 = vadd.xlane.f32.xlu0 %v1332_v29 }
 0x329   : > { %1330 = vadd.xlane.f32.xlu1 %v1329_v30 }
 0x32a   : > { %v2775_v31 = vpop.eup %2774 }
 0x32b   : > { %v2777_v32 = vpop.eup %2776  ;;  %v1338_v33 = vsel %vm213_vm0, %v2775_v31, 0.0 }
 0x32c   : > { %v1335_v34 = vsel %vm213_vm0, %v2777_v32, 0.0  ;;  %1339 = vadd.xlane.f32.xlu0 %v1338_v33  ;;  %v2469_v33 = vld [vmem:[%s3210_s1 + $0x184] ss:$0 sm:$0xff] }
 0x32d   : > { %1336 = vadd.xlane.f32.xlu1 %v1335_v34 }
 0x32e   : > { %v2779_v37 = vpop.eup %2778 }
 0x32f   : > { %v1341_v38 = vsel %vm213_vm0, %v2779_v37, 0.0 }
 0x331   : > { %1342 = vadd.xlane.f32.xlu1 %v1341_v38 }
 0x3a9   : > { %v1322_v39 = vpop.xlane.xlu0 %1321 }
 0x3aa   : > { %2780 = vrcp.f32 %v1322_v39 }
 0x3ad   : > { %v1325_v40 = vpop.xlane.xlu1 %1324  ;;  %v1328_v41 = vpop.xlane.xlu0 %1327 }
 0x3ae   : > { %2782 = vrcp.f32 %v1325_v40 }
 0x3af   : > { %2784 = vrcp.f32 %v1328_v41 }
 0x3b1   : > { %v1334_v42 = vpop.xlane.xlu0 %1333 }
 0x3b2   : > { %v1331_v43 = vpop.xlane.xlu1 %1330  ;;  %2786 = vrcp.f32 %v1334_v42 }
 0x3b3   : > { %2788 = vrcp.f32 %v1331_v43 }
 0x3b5   : > { %v1340_v45 = vpop.xlane.xlu0 %1339 }
 0x3b6   : > { %v1337_v46 = vpop.xlane.xlu1 %1336  ;;  %2790 = vrcp.f32 %v1340_v45 }
 0x3b7   : > { %v2781_v47 = vpop.eup %2780  ;;  %2792 = vrcp.f32 %v1337_v46 }
 0x3b8   : > { %v1345_v48 = vmul.f32 %v2781_v47, %v2765_v20 }
 0x3ba   : > { %v1343_v49 = vpop.xlane.xlu1 %1342  ;;  %2656 = vmatmul.mubr.msk.f32.vlgmr.msra.gmra.mxu0 %vm213_vm0, %v1345_v48 }
 0x3bb   : > { %v2783_v50 = vpop.eup %2782  ;;  %2794 = vrcp.f32 %v1343_v49  ;;  %2664 = vmatpush3.msra.mxu0 %v2982_v11  ;;  %2665 = vmatprep.mubr.msk.f32.mxu0 %vm2813_vm5, %v2812_v44 }
 0x3bc   : > { %v2785_v51 = vpop.eup %2784  ;;  %v1347_v52 = vmul.f32 %v2783_v50, %v2769_v24  ;;  %2673 = vmatprep.subr.mxu0 %v2812_v44 }
 0x3bd   : > { %v1349_v53 = vmul.f32 %v2785_v51, %v2767_v23 }
 0x3be   : > { %2661 = vmatmul.mubr.msk.f32.vlgmr.msra.gmra.mxu1 %vm213_vm0, %v1347_v52 }
 0x3bf   : > { %2666 = vmatmul.mubr.msk.f32.vlgmr.msra.gmra.mxu0 %vm213_vm0, %v1349_v53  ;;  %2669 = vmatpush3.msra.mxu1 %v2972_v8  ;;  %v2787_v54 = vpop.eup %2786  ;;  %v2094_v53 = vld [vmem:[%s3211_s2 + $0x18] sm:$0xff] }
 0x3c0   : > { %2674 = vmatpush3.msra.mxu0 %v2984_v12  ;;  %2670 = vmatprep.mubr.msk.f32.mxu1 %vm2813_vm5, %v2812_v44  ;;  %v2789_v11 = vpop.eup %2788  ;;  %v1353_v55 = vmul.f32 %v2787_v54, %v2771_v27  ;;  %v2093_v54 = vld [vmem:[%s3211_s2 + $0x10] sm:$0xff] }
 0x3c1   : > { %2675 = vmatprep.mubr.msk.f32.mxu0 %vm2813_vm5, %v2812_v44  ;;  %2678 = vmatprep.subr.mxu1 %v2812_v44  ;;  %v1351_v56 = vmul.f32 %v2789_v11, %v2773_v28  ;;  %v2092_v11 = vld [vmem:[%s3211_s2 + $0x8] sm:$0xff] }
 0x3c2   : > { %2683 = vmatprep.subr.mxu0 %v2812_v44 }
 0x3c3   : > { %2676 = vmatmul.mubr.msk.f32.vlgmr.msra.gmra.mxu0 %vm213_vm0, %v1353_v55  ;;  %v2791_v57 = vpop.eup %2790  ;;  %2671 = vmatmul.mubr.msk.f32.vlgmr.msra.gmra.mxu1 %vm213_vm0, %v1351_v56  ;;  %v2091_v55 = vld [vmem:[%s3211_s2] sm:$0xff]  ;;  %v2198_v56 = vld [vmem:[%s3210_s1 + $0x108] sm:$0xff] }
 0x3c4   : > { %2684 = vmatpush3.msra.mxu0 %v2990_v15  ;;  %v2793_v8 = vpop.eup %2792  ;;  %2679 = vmatpush3.msra.mxu1 %v2976_v9  ;;  %v1357_v12 = vmul.f32 %v2791_v57, %v2775_v31  ;;  %v1961_v15 = vld [vmem:[%s3210_s1 + $0x88] sm:$0xff]  ;;  %v2197_v57 = vld [vmem:[%s3210_s1 + $0x100] sm:$0xff] }
 0x3c5   : > { %2680 = vmatprep.mubr.msk.f32.mxu1 %vm2813_vm5, %v2812_v44  ;;  %2685 = vmatprep.mubr.msk.f32.mxu0 %vm2813_vm5, %v2812_v44  ;;  %v1355_v58 = vmul.f32 %v2793_v8, %v2777_v32  ;;  %v2196_v8 = vld [vmem:[%s3210_s1 + $0xf8] sm:$0xff] }
 0x3c6   : > { %2688 = vmatprep.subr.mxu1 %v2812_v44  ;;  %2693 = vmatprep.subr.mxu0 %v1961_v15 }
 0x3c7   : > { %2686 = vmatmul.mubr.msk.f32.vlgmr.msra.gmra.mxu0 %vm213_vm0, %v1357_v12  ;;  %2681 = vmatmul.mubr.msk.f32.vlgmr.msra.gmra.mxu1 %vm213_vm0, %v1355_v58  ;;  %v2195_v12 = vld [vmem:[%s3210_s1 + $0xf0] sm:$0xff]  ;;  %v2194_v58 = vld [vmem:[%s3210_s1 + $0xe8] sm:$0xff] }
 0x3c8   : > { %v2795_v59 = vpop.eup %2794  ;;  %2689 = vmatpush3.msra.mxu1 %v2978_v10  ;;  %2690 = vmatprep.mubr.msk.f32.mxu1 %vm2813_vm5, %v2812_v44  ;;  %v1959_v10 = vld [vmem:[%s3210_s1 + $0x78] sm:$0xff]  ;;  %v1958_v44 = vld [vmem:[%s3210_s1 + $0x70] sm:$0xff] }
 0x3c9   : > { %v1359_v9 = vmul.f32 %v2795_v59, %v2779_v37  ;;  %2694 = vmatpush3.msra.mxu0 %v1961_v15  ;;  %2704 = vmatprep.subr.mxu1 %v2094_v53  ;;  %v2193_v59 = vld [vmem:[%s3210_s1 + $0xe0] sm:$0xff]  ;;  %v2191_v15 = vld [vmem:[%s3210_s1 + $0xd0] sm:$0xff] }
 0x3ca   : > { %2695 = vmatprep.subr.mxu0 %v1960_v60 }
 0x3cb   : > { %2691 = vmatmul.mubr.msk.f32.vlgmr.msra.gmra.mxu1 %vm213_vm0, %v1359_v9  ;;  %2696 = vmatpush3.msra.mxu0 %v1960_v60  ;;  %v2192_v9 = vld [vmem:[%s3210_s1 + $0xd8] sm:$0xff]  ;;  %v2190_v60 = vld [vmem:[%s3210_s1 + $0xc8] sm:$0xff] }
 0x3cc   : > { %2697 = vmatprep.subr.mxu0 %v1959_v10  ;;  %2705 = vmatpush3.msra.mxu1 %v2094_v53 }
 0x3cd   : > { %2698 = vmatpush3.msra.mxu0 %v1959_v10  ;;  %2706 = vmatprep.subr.mxu1 %v2093_v54  ;;  %v2189_v10 = vld [vmem:[%s3210_s1 + $0xc0] sm:$0xff] }
 0x3ce   : > { %2699 = vmatprep.subr.mxu0 %v1958_v44  ;;  %2707 = vmatpush3.msra.mxu1 %v2093_v54 }
 0x3cf   : > { %2700 = vmatpush3.msra.mxu0 %v1958_v44  ;;  %2708 = vmatprep.subr.mxu1 %v2092_v11  ;;  %v2188_v44 = vld [vmem:[%s3210_s1 + $0xb8] sm:$0xff] }
 0x3d0   : > { %2709 = vmatpush3.msra.mxu1 %v2092_v11  ;;  %2715 = vmatprep.subr.mxu0 %v2198_v56 }
 0x3d1   : > { %2710 = vmatprep.subr.mxu1 %v2091_v55 }
 0x3d2   : > { %2711 = vmatpush3.msra.mxu1 %v2091_v55 }
 0x47a   : > { %v1429_v61 = vpop.f32.mrf.mxu0 }
 0x47b   : > { %v1944_v5 = vsel %vm400_vm4, %v1429_v61, 0.0  ;;  %v2187_v61 = vld [vmem:[%s3210_s1 + $0xb0] sm:$0xff] }
 0x47c   : > { %v2657_v62 = vpop.f32.mrf.mxu0 }
 0x47e   : > { %v1502_v63 = vpop.f32.mrf.mxu1 }
 0x47f   : > { %v1575_v0 = vpop.f32.mrf.mxu0  ;;  %v1951_v22 = vsel %vm400_vm4, %v1502_v63, 0.0 }
 0x480   : > { %v2662_v1 = vpop.f32.mrf.mxu1  ;;  %v1945_v3 = vsel %vm400_vm4, %v1575_v0, 0.0 }
 0x481   : > { %v2667_v2 = vpop.f32.mrf.mxu0  ;;  %v1946_v13 = vadd.f32 %v1945_v3, %v1944_v5 }
 0x483   : > { %v1721_v4 = vpop.f32.mrf.mxu0  ;;  %v1648_v6 = vpop.f32.mrf.mxu1 }
 0x484   : > { %v1947_v7 = vsel %vm400_vm4, %v1721_v4, 0.0  ;;  %v1952_v17 = vsel %vm400_vm4, %v1648_v6, 0.0  ;;  %v2472_v6 = vld [vmem:[%s3210_s1 + $0x186] ss:$0 sm:$0xff] }
 0x485   : > { %v2677_v14 = vpop.f32.mrf.mxu0  ;;  %v2672_v16 = vpop.f32.mrf.mxu1  ;;  %v1948_v18 = vadd.f32 %v1947_v7, %v1946_v13  ;;  %v1953_v26 = vadd.f32 %v1952_v17, %v1951_v22  ;;  %v2473_v17 = vld [vmem:[%s3210_s1 + $0x187] ss:$0 sm:$0xff]  ;;  %v2184_v22 = vld [vmem:[%s3210_s1 + $0x98] sm:$0xff] }
 0x487   : > { %v1867_v19 = vpop.f32.mrf.mxu0  ;;  %v1794_v20 = vpop.f32.mrf.mxu1 }
 0x488   : > { %v1949_v21 = vsel %vm400_vm4, %v1867_v19, 0.0  ;;  %v1954_v23 = vsel %vm400_vm4, %v1794_v20, 0.0  ;;  %v2186_v20 = vld [vmem:[%s3210_s1 + $0xa8] sm:$0xff] }
 0x489   : > { %v1950_v24 = vadd.f32 %v1949_v21, %v1948_v18  ;;  %v2687_v25 = vpop.f32.mrf.mxu0  ;;  %v2682_v27 = vpop.f32.mrf.mxu1  ;;  %v1955_v28 = vadd.f32 %v1954_v23, %v1953_v26  ;;  %v2185_v21 = vld [vmem:[%s3210_s1 + $0xa0] sm:$0xff]  ;;  %v2183_v23 = vld [vmem:[%s3210_s1 + $0x90] sm:$0xff] }
 0x48b   : > { %2701 = vmatprep.mubr.msk.f32.mxu0 %vm400_vm4, %v1950_v24  ;;  %v1940_v29 = vpop.f32.mrf.mxu1  ;;  %v2474_v24 = vld [vmem:[%s3211_s2 + $0x20] ss:$0 sm:$0xff] }
 0x48c   : > { %v1956_v30 = vsel %vm400_vm4, %v1940_v29, 0.0 }
 0x48d   : > { %v1957_v31 = vadd.f32 %v1956_v30, %v1955_v28  ;;  %v2692_v32 = vpop.f32.mrf.mxu1 }
 0x48f   : > { %2702 = vmatmul.mubr.msk.f32.vlgmr.msra.gmra.mxu0 %vm400_vm4, %v1957_v31  ;;  %v2477_v31 = vld [vmem:[%s3210_s1 + $0x185] ss:$0 sm:$0xff] }
 0x490   : > { %2716 = vmatpush3.msra.mxu0 %v2198_v56 }
 0x491   : > { %2717 = vmatprep.subr.mxu0 %v2197_v57 }
 0x492   : > { %2718 = vmatpush3.msra.mxu0 %v2197_v57  ;;  %v2478_v57 = vld [vmem:[%s3210_s1 + $0x188] ss:$0 sm:$0xff] }
 0x493   : > { %2719 = vmatprep.subr.mxu0 %v2196_v8 }
 0x494   : > { %2720 = vmatpush3.msra.mxu0 %v2196_v8 }
 0x495   : > { %2721 = vmatprep.subr.mxu0 %v2195_v12 }
 0x496   : > { %2722 = vmatpush3.msra.mxu0 %v2195_v12 }
 0x497   : > { %2723 = vmatprep.subr.mxu0 %v2194_v58 }
 0x498   : > { %2724 = vmatpush3.msra.mxu0 %v2194_v58  ;;  %v2479_v58 = vld [vmem:[%s3210_s1 + $0x189] ss:$0 sm:$0xff] }
 0x499   : > { %2725 = vmatprep.subr.mxu0 %v2193_v59 }
 0x49a   : > { %2726 = vmatpush3.msra.mxu0 %v2193_v59 }
 0x49b   : > { %2727 = vmatprep.subr.mxu0 %v2192_v9 }
 0x49c   : > { %2728 = vmatpush3.msra.mxu0 %v2192_v9 }
 0x49d   : > { %2729 = vmatprep.subr.mxu0 %v2191_v15 }
 0x49e   : > { %2730 = vmatpush3.msra.mxu0 %v2191_v15  ;;  %v2324_v15 = vld [vmem:[%s3210_s1 + $0x128] sm:$0xff] }
 0x49f   : > { %2731 = vmatprep.subr.mxu0 %v2190_v60 }
 0x4a0   : > { %2732 = vmatpush3.msra.mxu0 %v2190_v60 }
 0x4a1   : > { %2733 = vmatprep.subr.mxu0 %v2189_v10 }
 0x4a2   : > { %2734 = vmatpush3.msra.mxu0 %v2189_v10 }
 0x4a3   : > { %2735 = vmatprep.subr.mxu0 %v2188_v44 }
 0x4a4   : > { %2736 = vmatpush3.msra.mxu0 %v2188_v44  ;;  %v2323_v44 = vld [vmem:[%s3210_s1 + $0x120] sm:$0xff] }
 0x4a5   : > { %2737 = vmatprep.subr.mxu0 %v2187_v61 }
 0x4a6   : > { %2738 = vmatpush3.msra.mxu0 %v2187_v61  ;;  %v2322_v61 = vld [vmem:[%s3210_s1 + $0x118] sm:$0xff] }
 0x4a7   : > { %2739 = vmatprep.subr.mxu0 %v2186_v20 }
 0x4a8   : > { %2740 = vmatpush3.msra.mxu0 %v2186_v20 }
 0x4a9   : > { %2741 = vmatprep.subr.mxu0 %v2185_v21 }
 0x4aa   : > { %2742 = vmatpush3.msra.mxu0 %v2185_v21 }
 0x4ab   : > { %2743 = vmatprep.subr.mxu0 %v2184_v22 }
 0x4ac   : > { %2744 = vmatpush3.msra.mxu0 %v2184_v22 }
 0x4ad   : > { %2745 = vmatprep.subr.mxu0 %v2183_v23 }
 0x4ae   : > { %2746 = vmatpush3.msra.mxu0 %v2183_v23 }
 0x54f   : > { %v2703_v34 = vpop.f32.mrf.mxu0 }
 0x550   : > { %v2045_v37 = vadd.f32 %v2703_v34, %v2469_v33 }
 0x551   : > { %v2039_v38 = vpop.f32.mrf.mxu0 }
 0x552   : > { %v2040_v39 = vadd.f32 %v2469_v33, %v2039_v38  ;;  %v2049_v40 = vadd.f32 %v2045_v37, %v2884_v36 }
 0x554   : > { %v2053_v41 = vsel %vm400_vm4, %v2049_v40, 0.0  ;;  %v2048_v42 = vadd.f32 %v2040_v39, %v2882_v35 }
 0x555   : > { %2054 = vadd.xlane.f32.xlu1 %v2053_v41 }
 0x556   : > { %v2050_v43 = vsel %vm400_vm4, %v2048_v42, 0.0 }
 0x557   : > { %2051 = vadd.xlane.f32.xlu0 %v2050_v43 }
 0x5de   : > { %v2055_v45 = vpop.xlane.xlu1 %2054 }
 0x5df   : > { %v2058_v46 = vmul.f32 0.03125, %v2055_v45 }
 0x5e0   : > { %v2052_v47 = vpop.xlane.xlu0 %2051 }
 0x5e1   : > { %v3087_v48 = vsub.f32 %v2049_v40, %v2058_v46  ;;  %v2057_v49 = vmul.f32 0.03125, %v2052_v47 }
 0x5e3   : > { %v3089_v50 = vsub.f32 %v2048_v42, %v2057_v49  ;;  %v2062_v51 = vmul.f32 %v3087_v48, %v3087_v48 }
 0x5e5   : > { %v2066_v36 = vsel %vm400_vm4, %v2062_v51, 0.0  ;;  %v2061_v35 = vmul.f32 %v3089_v50, %v3089_v50 }
 0x5e6   : > { %2067 = vadd.xlane.f32.xlu1 %v2066_v36 }
 0x5e7   : > { %v2063_v52 = vsel %vm400_vm4, %v2061_v35, 0.0 }
 0x5e8   : > { %2064 = vadd.xlane.f32.xlu0 %v2063_v52 }
 0x66f   : > { %v2068_v62 = vpop.xlane.xlu1 %2067 }
 0x670   : > { %v2070_v63 = vmul.f32 0.03125, %v2068_v62 }
 0x671   : > { %v2065_v0 = vpop.xlane.xlu0 %2064 }
 0x672   : > { %v2072_v1 = vadd.f32 1e-05, %v2070_v63  ;;  %v2069_v2 = vmul.f32 0.03125, %v2065_v0  ;;  %v2321_v0 = vld [vmem:[%s3210_s1 + $0x110] sm:$0xff] }
 0x674   : > { %2796 = vrsqrt.f32 %v2072_v1  ;;  %v2071_v3 = vadd.f32 1e-05, %v2069_v2 }
 0x676   : > { %2798 = vrsqrt.f32 %v2071_v3 }
 0x681   : > { %v2797_v4 = vpop.eup %2796 }
 0x682   : > { %v2076_v5 = vmul.f32 %v2797_v4, %v3087_v48 }
 0x683   : > { %v2799_v7 = vpop.eup %2798 }
 0x684   : > { %v2075_v13 = vmul.f32 %v2799_v7, %v3089_v50  ;;  %v2083_v14 = vmul.f32 %v2472_v6, %v2076_v5 }
 0x686   : > { %v2082_v16 = vmul.f32 %v2472_v6, %v2075_v13  ;;  %v2090_v19 = vadd.f32 %v2473_v17, %v2083_v14 }
 0x688   : > { %v2089_v18 = vadd.f32 %v2473_v17, %v2082_v16 }
 0x68a   : > { %2712 = vmatprep.mubr.msk.f32.mxu1 %vm400_vm4, %v2089_v18 }
 0x68b   : > { %2713 = vmatmul.mubr.msk.f32.vlgmr.msra.gmra.mxu1 %vm400_vm4, %v2090_v19 }
 0x74b   : > { %v2714_v25 = vpop.f32.mrf.mxu1 }
 0x74c   : > { %v2178_v26 = vadd.f32 %v2714_v25, %v2474_v24 }
 0x74d   : > { %v2172_v27 = vpop.f32.mrf.mxu1 }
 0x74e   : > { %v2173_v28 = vadd.f32 %v2474_v24, %v2172_v27  ;;  %v2182_v30 = vmax.f32 %v2178_v26, 0.0 }
 0x750   : > { %v2181_v29 = vmax.f32 %v2173_v28, 0.0  ;;  %v2480_v28 = vld [vmem:[%s3210_s1 + $0x18a] ss:$0 sm:$0xff] }
 0x752   : > { %2747 = vmatprep.mubr.f32.mxu0 %v2181_v29 }
 0x753   : > { %2748 = vmatmul.mubr.f32.vlgmr.msra.gmra.mxu0 %v2182_v30 }
 0x813   : > { %v2749_v32 = vpop.f32.mrf.mxu0 }
 0x814   : > { %v2276_v33 = vadd.f32 %v2749_v32, %v2477_v31 }
 0x815   : > { %v2270_v34 = vpop.f32.mrf.mxu0 }
 0x816   : > { %v2271_v37 = vadd.f32 %v2477_v31, %v2270_v34  ;;  %v2280_v38 = vadd.f32 %v2276_v33, %v2090_v19 }
 0x818   : > { %v2284_v39 = vsel %vm400_vm4, %v2280_v38, 0.0  ;;  %v2279_v40 = vadd.f32 %v2271_v37, %v2089_v18 }
 0x819   : > { %2285 = vadd.xlane.f32.xlu1 %v2284_v39 }
 0x81a   : > { %v2281_v41 = vsel %vm400_vm4, %v2279_v40, 0.0 }
 0x81b   : > { %2282 = vadd.xlane.f32.xlu0 %v2281_v41 }
 0x8a2   : > { %v2286_v42 = vpop.xlane.xlu1 %2285 }
 0x8a3   : > { %v2288_v43 = vmul.f32 0.03125, %v2286_v42 }
 0x8a4   : > { %v2283_v45 = vpop.xlane.xlu0 %2282 }
 0x8a5   : > { %v2290_v46 = vsub.f32 %v2280_v38, %v2288_v43  ;;  %v2287_v47 = vmul.f32 0.03125, %v2283_v45 }
 0x8a7   : > { %v2289_v48 = vsub.f32 %v2279_v40, %v2287_v47  ;;  %v2292_v49 = vmul.f32 %v2290_v46, %v2290_v46 }
 0x8a9   : > { %v2296_v50 = vsel %vm400_vm4, %v2292_v49, 0.0  ;;  %v2291_v51 = vmul.f32 %v2289_v48, %v2289_v48 }
 0x8aa   : > { %2297 = vadd.xlane.f32.xlu1 %v2296_v50 }
 0x8ab   : > { %v2293_v36 = vsel %vm400_vm4, %v2291_v51, 0.0 }
 0x8ac   : > { %2294 = vadd.xlane.f32.xlu0 %v2293_v36 }
 0x933   : > { %v2298_v35 = vpop.xlane.xlu1 %2297 }
 0x934   : > { %v2300_v52 = vmul.f32 0.03125, %v2298_v35 }
 0x935   : > { %v2295_v53 = vpop.xlane.xlu0 %2294 }
 0x936   : > { %v2302_v54 = vadd.f32 1e-05, %v2300_v52  ;;  %v2299_v11 = vmul.f32 0.03125, %v2295_v53 }
 0x938   : > { %2800 = vrsqrt.f32 %v2302_v54  ;;  %v2301_v55 = vadd.f32 1e-05, %v2299_v11 }
 0x93a   : > { %2802 = vrsqrt.f32 %v2301_v55 }
 0x945   : > { %v2801_v56 = vpop.eup %2800 }
 0x946   : > { %v2306_v8 = vmul.f32 %v2801_v56, %v2290_v46 }
 0x947   : > { %v2803_v12 = vpop.eup %2802 }
 0x948   : > { %v2313_v59 = vmul.f32 %v2478_v57, %v2306_v8  ;;  %v2305_v9 = vmul.f32 %v2803_v12, %v2289_v48 }
 0x94a   : > { %v2320_v60 = vadd.f32 %v2479_v58, %v2313_v59  ;;  %v2312_v10 = vmul.f32 %v2478_v57, %v2305_v9 }
 0x94c   : > { %v2328_v62 = vmul.f32 %v2324_v15, %v2320_v60  ;;  %v2319_v63 = vadd.f32 %v2479_v58, %v2312_v10  ;;  %v2326_v3 = vmul.f32 %v2322_v61, %v2320_v60 }
 0x94e   : > { %v2338_v1 = vsel %vm400_vm4, %v2328_v62, 0.0  ;;  %v2327_v2 = vmul.f32 %v2323_v44, %v2319_v63  ;;  %v2325_v5 = vmul.f32 %v2321_v0, %v2319_v63  ;;  %v2332_v6 = vsel %vm400_vm4, %v2326_v3, 0.0 }
 0x94f   : > { %2339 = vadd.xlane.f32.xlu1 %v2338_v1 }
 0x950   : > { %v2335_v4 = vsel %vm400_vm4, %v2327_v2, 0.0  ;;  %v2329_v7 = vsel %vm400_vm4, %v2325_v5, 0.0 }
 0x951   : > { %2336 = vadd.xlane.f32.xlu0 %v2335_v4 }
 0x953   : > { %2333 = vadd.xlane.f32.xlu1 %v2332_v6 }
 0x955   : > { %2330 = vadd.xlane.f32.xlu0 %v2329_v7 }
 0x9d8   : > { %v2340_v13 = vpop.xlane.xlu1 %2339 }
 0x9da   : > { %v2337_v14 = vpop.xlane.xlu0 %2336 }
 0x9db   : > { %v2348_v16 = vadd.f32 %v2340_v13, %v2337_v14 }
 0x9dc   : > { %v2334_v18 = vpop.xlane.xlu1 %2333 }
 0x9dd   : > { %v2349_v17 = vrot.slane %v2348_v16, 4 }
 0x9de   : > { %v2331_v19 = vpop.xlane.xlu0 %2330 }
 0x9df   : > { %v2350_v20 = vadd.f32 %v2349_v17, %v2348_v16  ;;  %v2341_v21 = vadd.f32 %v2334_v18, %v2331_v19 }
 0x9e1   : > { %v2351_v22 = vrot.slane %v2350_v20, 2  ;;  %v2342_v23 = vrot.slane %v2341_v21, 4 }
 0x9e3   : > { %v2352_v24 = vadd.f32 %v2351_v22, %v2350_v20  ;;  %v2343_v25 = vadd.f32 %v2342_v23, %v2341_v21 }
 0x9e5   : > { %v2353_v26 = vrot.slane %v2352_v24, 1  ;;  %v2344_v27 = vrot.slane %v2343_v25, 2 }
 0x9e7   : > { %v2354_v29 = vadd.f32 %v2353_v26, %v2352_v24  ;;  %v2345_v30 = vadd.f32 %v2344_v27, %v2343_v25 }
 0x9e9   : > { %v2361_v31 = vadd.f32 %v2480_v28, %v2354_v29  ;;  %v2346_v32 = vrot.slane %v2345_v30, 1 }
 0x9eb   : > { %v2347_v33 = vadd.f32 %v2346_v32, %v2345_v30  ;;  %v2364_v34 = vrot.slane %v2361_v31, 7 }
 0x9ed   : > { %v2360_v37 = vadd.f32 %v2480_v28, %v2347_v33 }
 0x9ef   : > { %v2366_v38 = vsel %vm2365_vm6, %v2364_v34, %v2360_v37 }
 0x9f0   : > { %2369 = vst.msk [vmem:[%s168_s24] sm:$0x3] %vm2368_vm7, %v2366_v38 }
 0x9f1 PF: > { %s13_s12 = sadd.s32 1, %s2810_s12  }
 0x9f2   : > { %p10_p4 = scmp.ge.s32.totalorder %s13_s12, 6  }
 0x9f4   :  { %12 = sbr.rel (!%p10_p4) target bundleno = 1 (0x1), region = 62 }

</bundles_post_ra>
